<compile_context>
chip_gen: v5e
topology: v5e:2x2
jax: 0.10.0
libtpu: 0.0.40
codegen_flags: <defaults>
</compile_context>

<pallas_src>
import jax
import jax.numpy as jnp
from jax.experimental import pallas as pl
from jax.experimental.pallas import tpu as pltpu


def _find_noise_kernel(x_ref, n_ref, w_ref, c_ref, out_ref, c_bf16_ref):
    # Hoisted add + f32->bf16 pack: done once per M-tile (j == 0) and reused
    # for every V-tile j, instead of being redone n_v times.
    @pl.when(pl.program_id(1) == 0)
    def _():
        c = x_ref[...] + n_ref[...]
        c_ref[...] = c.astype(c_ref.dtype)            # adversarial embeds C
        c_bf16_ref[...] = c.astype(c_bf16_ref.dtype)  # cached MXU feed

    # MXU: (tM, H) bf16 x (H, tV) bf16 -> f32 accumulate -> logits tile.
    out_ref[...] = jnp.dot(
        c_bf16_ref[...], w_ref[...], preferred_element_type=jnp.float32
    ).astype(out_ref.dtype)


def _round_up(x, m):
    return ((x + m - 1) // m) * m


def _vmem_capacity_bytes():
    """Physical VMEM per TensorCore; conservative (v7x-sized) fallback."""
    try:
        cap = getattr(pltpu.get_tpu_info(), "vmem_capacity_bytes", None)
        if cap:
            return int(cap)
    except Exception:
        pass
    return 64 * 1024 * 1024


def _vmem_estimate(tM, tV, H, out_bytes):
    return (2 * tM * H * 4            # x tile (f32, double buffered)
            + 2 * tM * H * 4          # noise tile
            + 2 * H * tV * 2          # weight tile (bf16)
            + 2 * tM * H * 4          # C output tile
            + 2 * tM * tV * out_bytes  # logits tile
            + tM * H * 2)             # bf16 scratch


def _pick_tiles(B, S_pad, H_pad, V, out_bytes, budget):
    """Largest (tM, tV) fitting `budget`; tM never straddles a batch row:
    it either divides S_pad, or is a whole multiple of S_pad dividing B*S_pad."""
    M = B * S_pad
    tm_cands = {t for t in range(16, min(S_pad, 512) + 1, 16) if S_pad % t == 0}
    tm_cands |= {k * S_pad for k in range(1, B + 1)
                 if k * S_pad <= 512 and M % (k * S_pad) == 0}
    tm_cands = sorted(tm_cands, reverse=True)

    if V % 128 == 0:
        tv_cands = sorted(
            {t for t in range(128, min(V, 1024) + 1, 128) if V % t == 0},
            reverse=True)
    else:
        tv_cands = [V]  # full-dim block is always legal

    for tM in tm_cands:        # tM first: weight re-streaming scales as 1/tM
        for tV in tv_cands:
            if _vmem_estimate(tM, tV, H_pad, out_bytes) <= budget:
                return tM, tV
    return tm_cands[-1], tv_cands[-1]


def find_noise_forward(x, noise, w, start, end, *, logits_dtype=jnp.float32):
    """Returns (C, logits).

    C == FindNoise.get_adv(x, start, end); logits == stand-in model(inputs_embeds=C).
    `start`/`end` are static Python ints, only used wrapper-side to build the
    zero-padded noise slab, so the kernel has no data-dependent slicing.
    Pass logits_dtype=jnp.bfloat16 to halve logits writeback when tolerated.
    """
    B, S, H = x.shape
    L = end - start
    assert noise.shape == (L, H), (noise.shape, (L, H))
    assert w.shape[0] == H
    V = w.shape[1]

    # Zero-pad S to a multiple of 16 (bf16 sublane packing) and H to a multiple
    # of 128 (lane-dense vregs, full MXU K).  Padded rows/cols are zero, padded
    # W rows are zero, so the visible results are unchanged after slicing.
    S_pad = _round_up(S, 16)
    H_pad = _round_up(H, 128)
    out_bytes = jnp.dtype(logits_dtype).itemsize

    x_p = jnp.zeros((B, S_pad, H_pad), x.dtype).at[:, :S, :H].set(x)
    noise_slab = (jnp.zeros((S_pad, H_pad), x.dtype)
                  .at[start:end, :H].set(noise.astype(x.dtype)))
    w_p = jnp.zeros((H_pad, V), jnp.bfloat16).at[:H, :].set(w.astype(jnp.bfloat16))

    # Fold batch into the matmul M dimension.
    M = B * S_pad
    x2 = x_p.reshape(M, H_pad)

    # Per-generation VMEM sizing: ~75% of physical capacity as the Mosaic limit
    # (≈48 MiB on v7x, ≈96 MiB on v5e/v6e), tiles sized to ~80% of that.
    vmem_cap = _vmem_capacity_bytes()
    vmem_limit = min(int(0.75 * vmem_cap), 100 * 1024 * 1024)
    tM, tV = _pick_tiles(B, S_pad, H_pad, V, out_bytes, int(0.8 * vmem_limit))

    n_m = M // tM
    n_v = V // tV

    if tM <= S_pad:
        tpb = S_pad // tM          # M-tiles per batch element
        noise_in = noise_slab
        noise_map = (lambda i, j: (0, 0)) if tpb == 1 else (lambda i, j: (i % tpb, 0))
    else:
        # One M-tile spans k whole batch rows: tile the (S_pad, H_pad) slab so
        # a single resident (tM, H_pad) noise block serves every M-tile.
        k = tM // S_pad
        noise_in = jnp.tile(noise_slab, (k, 1))
        noise_map = lambda i, j: (0, 0)

    cost = pl.CostEstimate(
        flops=2 * M * H_pad * V,
        transcendentals=0,
        bytes_accessed=(n_m * H_pad * V * 2      # bf16 weight re-streamed per M-tile
                        + M * H_pad * 4 * 2      # x read + C write (f32)
                        + noise_in.size * 4
                        + M * V * out_bytes),    # logits write
    )

    c2, logits2 = pl.pallas_call(
        _find_noise_kernel,
        out_shape=(
            jax.ShapeDtypeStruct((M, H_pad), x.dtype),      # adversarial embeds C
            jax.ShapeDtypeStruct((M, V), logits_dtype),     # stand-in model output
        ),
        grid=(n_m, n_v),
        in_specs=[
            pl.BlockSpec((tM, H_pad), lambda i, j: (i, 0)),  # x rows per M-tile
            pl.BlockSpec((tM, H_pad), noise_map),            # padded noise slab
            pl.BlockSpec((H_pad, tV), lambda i, j: (0, j)),  # streamed weight tile
        ],
        out_specs=(
            pl.BlockSpec((tM, H_pad), lambda i, j: (i, 0)),  # C, resident across j
            pl.BlockSpec((tM, tV), lambda i, j: (i, j)),     # lane-dense logits tile
        ),
        scratch_shapes=[pltpu.VMEM((tM, H_pad), jnp.bfloat16)],  # cached bf16 C
        compiler_params=pltpu.CompilerParams(
            dimension_semantics=("parallel", "arbitrary"),
            vmem_limit_bytes=vmem_limit,
        ),
        cost_estimate=cost,
    )(x2, noise_in, w_p)

    C = c2.reshape(B, S_pad, H_pad)[:, :S, :H]
    logits = logits2.reshape(B, S_pad, V)[:, :S, :]
    return C, logits


if __name__ == "__main__":
    B, S, H, V = 2, 16, 32, 512
    start, end = 4, 12            # noise covers seq positions [4, 12)
    L = end - start

    key = jax.random.PRNGKey(0)
    kx, kn, kw = jax.random.split(key, 3)
    x = jax.random.normal(kx, (B, S, H), dtype=jnp.float32)
    noise = 0.1 * jax.random.normal(kn, (L, H), dtype=jnp.float32)
    w = jax.random.normal(kw, (H, V), dtype=jnp.float32) / jnp.sqrt(H)

    c, logits = find_noise_forward(x, noise, w, start, end)
    jax.block_until_ready((c, logits))

    # Pure-JAX reference (same semantics as the PyTorch module).
    # TODO(synk): `self.model` is an arbitrary external network (e.g. an HF LM)
    # with no generic Pallas translation; the bf16 linear head stands in for it.
    c_ref = jnp.concatenate(
        [x[:, :start, :], x[:, start:end, :] + noise[None], x[:, end:, :]], axis=1)
    logits_ref = jnp.einsum(
        "bsh,hv->bsv",
        c_ref.astype(jnp.bfloat16), w.astype(jnp.bfloat16),
        preferred_element_type=jnp.float32).astype(jnp.float32)

    assert jnp.allclose(c, c_ref, atol=1e-6), "adversarial embeds mismatch"
    assert jnp.allclose(logits, logits_ref, atol=2e-2, rtol=2e-2), "logits mismatch"

    print("KERNEL_OK")
</pallas_src>

<mosaic_0001>
module attributes {stable_mosaic.version = 11 : i64} {
  func.func @_find_noise_kernel(%arg0: i32, %arg1: i32, %arg2: memref<32x128xf32, #tpu.memory_space<vmem>>, %arg3: memref<32x128xf32, #tpu.memory_space<vmem>>, %arg4: memref<128x512xbf16, #tpu.memory_space<vmem>>, %arg5: memref<32x128xf32, #tpu.memory_space<vmem>>, %arg6: memref<32x512xf32, #tpu.memory_space<vmem>>, %arg7: memref<32x128xbf16, #tpu.memory_space<vmem>>) attributes {dimension_semantics = [#tpu.dimension_semantics<parallel>, #tpu.dimension_semantics<arbitrary>], iteration_bounds = array<i64: 1, 1>, scalar_prefetch = 0 : i64, scratch_operands = 1 : i64, tpu.core_type = #tpu.core_type<tc>, window_params = [{transform_indices = @transform_0, window_bounds = array<i64: 32, 128>}, {pipeline_mode = #tpu.pipeline_mode<synchronous>, transform_indices = @transform_1, window_bounds = array<i64: 32, 128>}, {transform_indices = @transform_2, window_bounds = array<i64: 128, 512>}, {transform_indices = @transform_3, window_bounds = array<i64: 32, 128>}, {transform_indices = @transform_4, window_bounds = array<i64: 32, 512>}]} {
    %c0_i32 = arith.constant 0 : i32
    %0 = arith.cmpi eq, %arg1, %c0_i32 : i32
    %1 = arith.extui %0 : i1 to i32
    %c0_i32_0 = arith.constant 0 : i32
    %2 = arith.cmpi ne, %1, %c0_i32_0 : i32
    scf.if %2 {
      %c0_6 = arith.constant 0 : index
      %c0_7 = arith.constant 0 : index
      %7 = vector.load %arg2[%c0_6, %c0_7] : memref<32x128xf32, #tpu.memory_space<vmem>>, vector<32x128xf32>
      %c0_8 = arith.constant 0 : index
      %c0_9 = arith.constant 0 : index
      %8 = vector.load %arg3[%c0_8, %c0_9] : memref<32x128xf32, #tpu.memory_space<vmem>>, vector<32x128xf32>
      %9 = arith.addf %7, %8 : vector<32x128xf32>
      %c0_10 = arith.constant 0 : index
      %c0_11 = arith.constant 0 : index
      %10 = vector.load %arg5[%c0_10, %c0_11] : memref<32x128xf32, #tpu.memory_space<vmem>>, vector<32x128xf32>
      tpu.vector_store %arg5[%c0_10, %c0_11], %9 {strides = array<i32>} : memref<32x128xf32, #tpu.memory_space<vmem>>, vector<32x128xf32>,
      %11 = arith.truncf %9 : vector<32x128xf32> to vector<32x128xbf16>
      %c0_12 = arith.constant 0 : index
      %c0_13 = arith.constant 0 : index
      %12 = vector.load %arg7[%c0_12, %c0_13] : memref<32x128xbf16, #tpu.memory_space<vmem>>, vector<32x128xbf16>
      tpu.vector_store %arg7[%c0_12, %c0_13], %11 {strides = array<i32>} : memref<32x128xbf16, #tpu.memory_space<vmem>>, vector<32x128xbf16>,
    } else {
    }
    %c0 = arith.constant 0 : index
    %c0_1 = arith.constant 0 : index
    %3 = vector.load %arg7[%c0, %c0_1] : memref<32x128xbf16, #tpu.memory_space<vmem>>, vector<32x128xbf16>
    %c0_2 = arith.constant 0 : index
    %c0_3 = arith.constant 0 : index
    %4 = vector.load %arg4[%c0_2, %c0_3] : memref<128x512xbf16, #tpu.memory_space<vmem>>, vector<128x512xbf16>
    %cst = arith.constant dense<0.000000e+00> : vector<32x512xf32>
    %5 = tpu.matmul %3, %4, %cst {dimension_numbers = #tpu.dot_dimension_numbers<[1], [0], [0], [1], [0, 0, 1, 1], [], []>} : vector<32x128xbf16>, vector<128x512xbf16>, vector<32x512xf32> -> vector<32x512xf32>
    %c0_4 = arith.constant 0 : index
    %c0_5 = arith.constant 0 : index
    %6 = vector.load %arg6[%c0_4, %c0_5] : memref<32x512xf32, #tpu.memory_space<vmem>>, vector<32x512xf32>
    tpu.vector_store %arg6[%c0_4, %c0_5], %5 {strides = array<i32>} : memref<32x512xf32, #tpu.memory_space<vmem>>, vector<32x512xf32>,
    return
  }
  func.func @transform_0(%arg0: i32, %arg1: i32) -> (i32, i32) {
    %c0_i32 = arith.constant 0 : i32
    %c0_i32_0 = arith.constant 0 : i32
    return %arg0, %c0_i32 : i32, i32
  }
  func.func @transform_1(%arg0: i32, %arg1: i32) -> (i32, i32) {
    %c0_i32 = arith.constant 0 : i32
    %c0_i32_0 = arith.constant 0 : i32
    %c0_i32_1 = arith.constant 0 : i32
    return %c0_i32, %c0_i32_0 : i32, i32
  }
  func.func @transform_2(%arg0: i32, %arg1: i32) -> (i32, i32) {
    %c0_i32 = arith.constant 0 : i32
    %c0_i32_0 = arith.constant 0 : i32
    return %c0_i32, %arg1 : i32, i32
  }
  func.func @transform_3(%arg0: i32, %arg1: i32) -> (i32, i32) {
    %c0_i32 = arith.constant 0 : i32
    %c0_i32_0 = arith.constant 0 : i32
    return %arg0, %c0_i32 : i32, i32
  }
  func.func @transform_4(%arg0: i32, %arg1: i32) -> (i32, i32) {
    %c0_i32 = arith.constant 0 : i32
    return %arg0, %arg1 : i32, i32
  }
}

</mosaic_0001>

<bundles_post_ra>
// kernel: tpu_custom_call.1
= control target key start
LH: loop header
LB: loop body
LE: loop exit
PB: predicated region body
PF: predicated region fallthrough
CT: control target
= control target key end

     0   :  { %10 = vsyncpa [#allocation4], 0  ;;  %s811_s0 = inlined_call_operand.hbm [shape: f32[32,128], index: 0, kind: input, shape index: {}]   ;;  %s812_s1 = inlined_call_operand.hbm [shape: f32[32,128], index: 1, kind: input, shape index: {}]   ;;  %s813_s2 = inlined_call_operand.hbm [shape: bf16[128,512], index: 2, kind: input, shape index: {}]   ;;  %s814_s3 = inlined_call_operand.hbm [shape: f32[32,128], index: 3, kind: output, shape index: {0}]   ;;  %s815_s4 = inlined_call_operand.hbm [shape: f32[32,512], index: 4, kind: output, shape index: {1}]  }
   0x1   :  { %11 = vsyncpa [#allocation7], 0 }
   0x2   :  { %12 = vsyncpa [#allocation5], 0 }
   0x3   :  { %13 = vsyncpa [#allocation11], 0  ;;  %s31_s17 = sshll.u32 %s812_s1, 4  ;;  %s751_s18 = smov [#allocation6]   ;;  %s32_s17 = int_to_ptr.hbm [resolvable:$true] %s31_s17 }
   0x4   :  { %s33_s19 = sshll.u32 %s751_s18, 4  ;;  %s18_s22 = sshll.u32 %s811_s0, 4  ;;  %s34_s19 = int_to_ptr.vmem [resolvable:$true] %s33_s19  ;;  %s19_s22 = int_to_ptr.hbm [resolvable:$true] %s18_s22 }
   0x5   :  { %s752_s23 = smov 128   ;;  %s753_s24 = smov 8  }
   0x6   :  { %39 = dma.hbm_to_vmem [thread:$0]  %s32_s17, 512, %s34_s19, [#allocation7], %s752_s23, %s752_s23, %s753_s24  }
   0x7   :  { %s754_s25 = smov [#allocation3]   ;;  %s44_s1 = sshll.u32 %s813_s2, 4  ;;  %s45_s1 = int_to_ptr.hbm [resolvable:$true] %s44_s1 }
   0x8   :  { %s20_s26 = sshll.u32 %s754_s25, 4  ;;  %s755_s0 = smov [#allocation8]   ;;  %s21_s26 = int_to_ptr.vmem [resolvable:$true] %s20_s26 }
   0x9   :  { %26 = dma.hbm_to_vmem [thread:$0]  %s19_s22, 512, %s21_s26, [#allocation4], %s752_s23, %s752_s23, %s753_s24  }
   0xa   :  { %s46_s29 = sshll.u32 %s755_s0, 4  ;;  %s756_s30 = smov 256   ;;  %s47_s29 = int_to_ptr.vmem [resolvable:$true] %s46_s29 }
   0xb   :  { %s757_s5 = smov 16  }
   0xc   :  { %52 = dma.hbm_to_vmem [thread:$0]  %s45_s1, 4096, %s47_s29, [#allocation7], %s756_s30, %s756_s30, %s757_s5  }
   0xd   :  { %743 = dma.done.wait [#allocation4], 512  }
   0xe   :  { %744 = vsyncadd [#allocation4], 4294966784 }
   0xf   :  { %745 = dma.done.wait [#allocation7], 4608  }
  0x10   :  { %746 = vsyncadd [#allocation7], 4294962688  ;;  %v553_v0 = vld [vmem:[#allocation8 + $0xe0] sm:$0xf]  ;;  %v599_v1 = vld [vmem:[#allocation8 + $0xec] sm:$0xf0] }
  0x11   :  { %v597_v2 = vld [vmem:[#allocation8 + $0xe4] sm:$0xf]  ;;  %v554_v3 = vor.u32 %v599_v1, %v553_v0  ;;  %v555_v4 = vld [vmem:[#allocation8 + $0xf0] sm:$0xf0]  ;;  %v561_v5 = vld [vmem:[#allocation8 + $0xe8] sm:$0xf] }
  0x12   :  { %v600_v6 = vld [vmem:[#allocation8 + $0xf4] sm:$0xf0]  ;;  %v558_v7 = vor.u32 %v597_v2, %v555_v4  ;;  %v598_v9 = vld [vmem:[#allocation8 + $0xec] sm:$0xf]  ;;  %v563_v10 = vld [vmem:[#allocation8 + $0xf8] sm:$0xf0] }
  0x13   :  { %v562_v8 = vor.u32 %v600_v6, %v561_v5  ;;  %v537_v11 = vld [vmem:[#allocation8 + $0xc0] sm:$0xf]  ;;  %301 = vmatpush.bf16.msra.mxu0 %v554_v3  ;;  %v566_v12 = vor.u32 %v598_v9, %v563_v10  ;;  %v595_v13 = vld [vmem:[#allocation8 + $0xcc] sm:$0xf0]  ;;  %v593_v14 = vld [vmem:[#allocation8 + $0xc4] sm:$0xf] }
  0x14   :  { %v539_v15 = vld [vmem:[#allocation8 + $0xd0] sm:$0xf0]  ;;  %320 = vmatpush.bf16.msra.mxu1 %v558_v7  ;;  %v538_v16 = vor.u32 %v595_v13, %v537_v11  ;;  %v545_v18 = vld [vmem:[#allocation8 + $0xc8] sm:$0xf]  ;;  %v596_v19 = vld [vmem:[#allocation8 + $0xd4] sm:$0xf0] }
  0x15   :  { %339 = vmatpush.bf16.msra.mxu2 %v562_v8  ;;  %v542_v17 = vor.u32 %v593_v14, %v539_v15  ;;  %v594_v20 = vld [vmem:[#allocation8 + $0xcc] sm:$0xf]  ;;  %358 = vmatpush.bf16.msra.mxu3 %v566_v12  ;;  %v546_v21 = vor.u32 %v596_v19, %v545_v18  ;;  %v547_v22 = vld [vmem:[#allocation8 + $0xd8] sm:$0xf0]  ;;  %v521_v23 = vld [vmem:[#allocation8 + $0xa0] sm:$0xf] }
  0x16   :  { %v591_v24 = vld [vmem:[#allocation8 + $0xac] sm:$0xf0]  ;;  %v550_v25 = vor.u32 %v594_v20, %v547_v22  ;;  %v589_v26 = vld [vmem:[#allocation8 + $0xa4] sm:$0xf]  ;;  %v523_v27 = vld [vmem:[#allocation8 + $0xb0] sm:$0xf0] }
  0x17   :  { %v529_v28 = vld [vmem:[#allocation8 + $0xa8] sm:$0xf]  ;;  %302 = vmatpush.bf16.msra.mxu0 %v538_v16  ;;  %v522_v29 = vor.u32 %v591_v24, %v521_v23  ;;  %v592_v30 = vld [vmem:[#allocation8 + $0xb4] sm:$0xf0]  ;;  %v590_v31 = vld [vmem:[#allocation8 + $0xac] sm:$0xf]  ;;  %v526_v33 = vor.u32 %v589_v26, %v523_v27 }
  0x18   :  { %v531_v32 = vld [vmem:[#allocation8 + $0xb8] sm:$0xf0]  ;;  %321 = vmatpush.bf16.msra.mxu1 %v542_v17  ;;  %v530_v34 = vor.u32 %v592_v30, %v529_v28  ;;  %v505_v35 = vld [vmem:[#allocation8 + $0x80] sm:$0xf]  ;;  %v587_v36 = vld [vmem:[#allocation8 + $0x8c] sm:$0xf0] }
  0x19   :  { %340 = vmatpush.bf16.msra.mxu2 %v546_v21  ;;  %v585_v37 = vld [vmem:[#allocation8 + $0x84] sm:$0xf]  ;;  %359 = vmatpush.bf16.msra.mxu3 %v550_v25  ;;  %v534_v38 = vor.u32 %v590_v31, %v531_v32  ;;  %v507_v39 = vld [vmem:[#allocation8 + $0x90] sm:$0xf0]  ;;  %v513_v40 = vld [vmem:[#allocation8 + $0x88] sm:$0xf]  ;;  %v506_v44 = vor.u32 %v587_v36, %v505_v35 }
  0x1a   :  { %v588_v41 = vld [vmem:[#allocation8 + $0x94] sm:$0xf0]  ;;  %v586_v42 = vld [vmem:[#allocation8 + $0x8c] sm:$0xf]  ;;  %v515_v43 = vld [vmem:[#allocation8 + $0x98] sm:$0xf0]  ;;  %v510_v45 = vor.u32 %v585_v37, %v507_v39 }
  0x1b   :  { %303 = vmatpush.bf16.msra.mxu0 %v522_v29  ;;  %v514_v46 = vor.u32 %v588_v41, %v513_v40  ;;  %v489_v47 = vld [vmem:[#allocation8 + $0x60] sm:$0xf]  ;;  %v583_v48 = vld [vmem:[#allocation8 + $0x6c] sm:$0xf0]  ;;  %v581_v49 = vld [vmem:[#allocation8 + $0x64] sm:$0xf]  ;;  %v518_v50 = vor.u32 %v586_v42, %v515_v43 }
  0x1c   :  { %322 = vmatpush.bf16.msra.mxu1 %v526_v33  ;;  %v491_v51 = vld [vmem:[#allocation8 + $0x70] sm:$0xf0]  ;;  %v497_v52 = vld [vmem:[#allocation8 + $0x68] sm:$0xf]  ;;  %v584_v53 = vld [vmem:[#allocation8 + $0x74] sm:$0xf0]  ;;  %v490_v56 = vor.u32 %v583_v48, %v489_v47 }
  0x1d   :  { %341 = vmatpush.bf16.msra.mxu2 %v530_v34  ;;  %360 = vmatpush.bf16.msra.mxu3 %v534_v38  ;;  %v582_v54 = vld [vmem:[#allocation8 + $0x6c] sm:$0xf]  ;;  %v499_v55 = vld [vmem:[#allocation8 + $0x78] sm:$0xf0]  ;;  %v494_v57 = vor.u32 %v581_v49, %v491_v51  ;;  %v498_v58 = vor.u32 %v584_v53, %v497_v52  ;;  %v473_v59 = vld [vmem:[#allocation8 + $0x40] sm:$0xf] }
  0x1e   :  { %v579_v60 = vld [vmem:[#allocation8 + $0x4c] sm:$0xf0]  ;;  %v577_v61 = vld [vmem:[#allocation8 + $0x44] sm:$0xf]  ;;  %v502_v62 = vor.u32 %v582_v54, %v499_v55  ;;  %v475_v63 = vld [vmem:[#allocation8 + $0x50] sm:$0xf0] }
  0x1f   :  { %304 = vmatpush.bf16.msra.mxu0 %v506_v44  ;;  %v481_v0 = vld [vmem:[#allocation8 + $0x48] sm:$0xf]  ;;  %v580_v1 = vld [vmem:[#allocation8 + $0x54] sm:$0xf0]  ;;  %v578_v2 = vld [vmem:[#allocation8 + $0x4c] sm:$0xf]  ;;  %v474_v5 = vor.u32 %v579_v60, %v473_v59  ;;  %v478_v9 = vor.u32 %v577_v61, %v475_v63 }
  0x20   :  { %323 = vmatpush.bf16.msra.mxu1 %v510_v45  ;;  %v483_v3 = vld [vmem:[#allocation8 + $0x58] sm:$0xf0]  ;;  %v457_v4 = vld [vmem:[#allocation8 + $0x20] sm:$0xf]  ;;  %v575_v6 = vld [vmem:[#allocation8 + $0x2c] sm:$0xf0]  ;;  %v482_v10 = vor.u32 %v580_v1, %v481_v0 }
  0x21   :  { %342 = vmatpush.bf16.msra.mxu2 %v514_v46  ;;  %361 = vmatpush.bf16.msra.mxu3 %v518_v50  ;;  %v573_v7 = vld [vmem:[#allocation8 + $0x24] sm:$0xf]  ;;  %v459_v8 = vld [vmem:[#allocation8 + $0x30] sm:$0xf0]  ;;  %v465_v11 = vld [vmem:[#allocation8 + $0x28] sm:$0xf]  ;;  %v486_v14 = vor.u32 %v578_v2, %v483_v3  ;;  %v458_v22 = vor.u32 %v575_v6, %v457_v4 }
  0x22   :  { %v576_v12 = vld [vmem:[#allocation8 + $0x34] sm:$0xf0]  ;;  %v574_v13 = vld [vmem:[#allocation8 + $0x2c] sm:$0xf]  ;;  %v467_v15 = vld [vmem:[#allocation8 + $0x38] sm:$0xf0]  ;;  %v462_v23 = vor.u32 %v573_v7, %v459_v8 }
  0x23   :  { %305 = vmatpush.bf16.msra.mxu0 %v490_v56  ;;  %v69_v16 = vld [vmem:[#allocation3] sm:$0xff]  ;;  %v70_v17 = vld [vmem:[#allocation3 + $0x8] sm:$0xff]  ;;  %v71_v21 = vld [vmem:[#allocation3 + $0x10] sm:$0xff]  ;;  %v466_v29 = vor.u32 %v576_v12, %v465_v11  ;;  %v470_v35 = vor.u32 %v574_v13, %v467_v15  ;;  %s758_s2 = smov [#allocation9]   ;;  %s399_s9 = sshll.u32 %s814_s3, 4  ;;  %s400_s9 = int_to_ptr.hbm [resolvable:$true] %s399_s9 }
  0x24   :  { %324 = vmatpush.bf16.msra.mxu1 %v494_v57  ;;  %v441_v18 = vld [vmem:[#allocation8] sm:$0xf]  ;;  %v74_v20 = vld [vmem:[#allocation6 + $0x8] sm:$0xff]  ;;  %v72_v26 = vld [vmem:[#allocation3 + $0x18] sm:$0xff]  ;;  %s397_s6 = sshll.u32 %s758_s2, 4  ;;  %s759_s3 = smov [#allocation10]   ;;  %s398_s6 = int_to_ptr.vmem [resolvable:$true] %s397_s6 }
  0x25   :  { %343 = vmatpush.bf16.msra.mxu2 %v498_v58  ;;  %362 = vmatpush.bf16.msra.mxu3 %v502_v62  ;;  %v73_v19 = vld [vmem:[#allocation6] sm:$0xff]  ;;  %v78_v25 = vadd.f32 %v74_v20, %v70_v17  ;;  %v75_v27 = vld [vmem:[#allocation6 + $0x10] sm:$0xff]  ;;  %v76_v28 = vld [vmem:[#allocation6 + $0x18] sm:$0xff]  ;;  %s410_s10 = sshll.u32 %s759_s3, 4  ;;  %s412_s13 = sshll.u32 %s815_s4, 4  ;;  %s411_s10 = int_to_ptr.vmem [resolvable:$true] %s410_s10  ;;  %s413_s13 = int_to_ptr.hbm [resolvable:$true] %s412_s13 }
  0x26   :  { %v77_v24 = vadd.f32 %v73_v19, %v69_v16  ;;  %v571_v30 = vld [vmem:[#allocation8 + $0xc] sm:$0xf0]  ;;  %v569_v31 = vld [vmem:[#allocation8 + $0x4] sm:$0xf]  ;;  %v443_v32 = vld [vmem:[#allocation8 + $0x10] sm:$0xf0]  ;;  %v79_v33 = vadd.f32 %v75_v27, %v71_v21  ;;  %v80_v34 = vadd.f32 %v76_v28, %v72_v26 }
  0x27   :  { %306 = vmatpush.bf16.msra.mxu0 %v474_v5  ;;  %v449_v36 = vld [vmem:[#allocation8 + $0x8] sm:$0xf]  ;;  %v572_v37 = vld [vmem:[#allocation8 + $0x14] sm:$0xf0]  ;;  %v570_v39 = vld [vmem:[#allocation8 + $0xc] sm:$0xf]  ;;  %v442_v42 = vor.u32 %v571_v30, %v441_v18  ;;  %v446_v43 = vor.u32 %v569_v31, %v443_v32 }
  0x28   :  { %325 = vmatpush.bf16.msra.mxu1 %v478_v9  ;;  %v604_v38 = vpack.c.bf16 %v78_v25, %v77_v24  ;;  %81 = vst [vmem:[#allocation9] sm:$0xff] %v77_v24  ;;  %v451_v40 = vld [vmem:[#allocation8 + $0x18] sm:$0xf0]  ;;  %v609_v41 = vpack.c.bf16 %v80_v34, %v79_v33  ;;  %v450_v44 = vor.u32 %v572_v37, %v449_v36  ;;  %s760_s14 = smov 512   ;;  %s761_s15 = smov 32  }
  0x29   :  { %344 = vmatpush.bf16.msra.mxu2 %v482_v10  ;;  %363 = vmatpush.bf16.msra.mxu3 %v486_v14  ;;  %82 = vst [vmem:[#allocation9 + $0x8] sm:$0xff] %v78_v25  ;;  %v454_v45 = vor.u32 %v570_v39, %v451_v40 }
  0x2a   :  { %605 = vst [vmem:[#allocation2] sm:$0xff] %v604_v38  }
  0x2b   :  { %307 = vmatpush.bf16.msra.mxu0 %v458_v22  ;;  %611 = vst [vmem:[#allocation2 + $0x8] sm:$0xff] %v609_v41  }
  0x2c   :  { %326 = vmatpush.bf16.msra.mxu1 %v462_v23  ;;  %83 = vst [vmem:[#allocation9 + $0x10] sm:$0xff] %v79_v33 }
  0x2d   :  { %345 = vmatpush.bf16.msra.mxu2 %v466_v29  ;;  %364 = vmatpush.bf16.msra.mxu3 %v470_v35  ;;  %84 = vst [vmem:[#allocation9 + $0x18] sm:$0xff] %v80_v34 }
  0x2e   :  { %405 = dma.vmem_to_hbm [thread:$0]  %s398_s6, 512, %s400_s9, [#allocation5], %s752_s23, %s752_s23, %s753_s24  }
  0x2f   :  { %308 = vmatpush.bf16.msra.mxu0 %v442_v42 }
  0x30   :  { %327 = vmatpush.bf16.msra.mxu1 %v446_v43 }
  0x31   :  { %346 = vmatpush.bf16.msra.mxu2 %v450_v44  ;;  %365 = vmatpush.bf16.msra.mxu3 %v454_v45  ;;  %v567_v46 = vld [vmem:[#allocation2] sm:$0xff] }
  0x32   :  { %309 = vmatmul.bf16.vlgmr.msra.gmra.mxu0 %v567_v46  ;;  %v568_v47 = vld [vmem:[#allocation2 + $0x8] sm:$0xff] }
  0x33   :  { %328 = vmatmul.bf16.vlgmr.msra.gmra.mxu1 %v567_v46 }
  0x34   :  { %347 = vmatmul.bf16.vlgmr.msra.gmra.mxu2 %v567_v46  ;;  %366 = vmatmul.bf16.vlgmr.msra.gmra.mxu3 %v567_v46 }
  0x42   :  { %314 = vmatmul.bf16.gmra.mxu0 %v568_v47 }
  0x43   :  { %333 = vmatmul.bf16.gmra.mxu1 %v568_v47 }
  0x44   :  { %352 = vmatmul.bf16.gmra.mxu2 %v568_v47  ;;  %371 = vmatmul.bf16.gmra.mxu3 %v568_v47 }
  0xaf   :  { %v310_v48 = vpop.f32.mrf.mxu0 }
  0xb0   :  { %v329_v49 = vpop.f32.mrf.mxu1  ;;  %377 = vst [vmem:[#allocation10] sm:$0xff] %v310_v48 }
  0xb1   :  { %378 = vst [vmem:[#allocation10 + $0x8] sm:$0xff] %v329_v49 }
  0xb7   :  { %v348_v50 = vpop.f32.mrf.mxu2  ;;  %v367_v51 = vpop.f32.mrf.mxu3 }
  0xb8   :  { %379 = vst [vmem:[#allocation10 + $0x10] sm:$0xff] %v348_v50  ;;  %v312_v52 = vpop.f32.mrf.mxu0  ;;  %v331_v53 = vpop.f32.mrf.mxu1 }
  0xb9   :  { %380 = vst [vmem:[#allocation10 + $0x18] sm:$0xff] %v367_v51 }
  0xba   :  { %381 = vst [vmem:[#allocation10 + $0x20] sm:$0xff] %v312_v52 }
  0xbb   :  { %382 = vst [vmem:[#allocation10 + $0x28] sm:$0xff] %v331_v53 }
  0xbf   :  { %v350_v54 = vpop.f32.mrf.mxu2  ;;  %v369_v55 = vpop.f32.mrf.mxu3 }
  0xc0   :  { %383 = vst [vmem:[#allocation10 + $0x30] sm:$0xff] %v350_v54  ;;  %v315_v56 = vpop.f32.mrf.mxu0  ;;  %v334_v57 = vpop.f32.mrf.mxu1 }
  0xc1   :  { %384 = vst [vmem:[#allocation10 + $0x38] sm:$0xff] %v369_v55 }
  0xc2   :  { %385 = vst [vmem:[#allocation10 + $0x40] sm:$0xff] %v315_v56 }
  0xc3   :  { %386 = vst [vmem:[#allocation10 + $0x48] sm:$0xff] %v334_v57 }
  0xc7   :  { %v353_v58 = vpop.f32.mrf.mxu2  ;;  %v372_v59 = vpop.f32.mrf.mxu3 }
  0xc8   :  { %387 = vst [vmem:[#allocation10 + $0x50] sm:$0xff] %v353_v58  ;;  %v317_v60 = vpop.f32.mrf.mxu0  ;;  %v336_v61 = vpop.f32.mrf.mxu1 }
  0xc9   :  { %388 = vst [vmem:[#allocation10 + $0x58] sm:$0xff] %v372_v59 }
  0xca   :  { %389 = vst [vmem:[#allocation10 + $0x60] sm:$0xff] %v317_v60 }
  0xcb   :  { %390 = vst [vmem:[#allocation10 + $0x68] sm:$0xff] %v336_v61 }
  0xcf   :  { %v355_v62 = vpop.f32.mrf.mxu2  ;;  %v374_v63 = vpop.f32.mrf.mxu3 }
  0xd0   :  { %391 = vst [vmem:[#allocation10 + $0x70] sm:$0xff] %v355_v62 }
  0xd1   :  { %392 = vst [vmem:[#allocation10 + $0x78] sm:$0xff] %v374_v63 }
  0xd2   :  { %418 = dma.vmem_to_hbm [thread:$0]  %s411_s10, 2048, %s413_s13, [#allocation11], %s760_s14, %s760_s14, %s761_s15  }
  0xd3   :  { %747 = dma.done.wait [#allocation5], 512  }
  0xd4   :  { %748 = vsyncadd [#allocation5], 4294966784 }
  0xd5   :  { %749 = dma.done.wait [#allocation11], 2048  }
  0xd6   :  { %750 = vsyncadd [#allocation11], 4294965248 }
  0xd7   :  { %427 = vsyncpa [#allocation4], 1 }
  0xd8   :  { %428 = vsyncpa [#allocation7], 1 }
  0xd9   :  { %429 = vsyncpa [#allocation5], 1 }
  0xda   :  { %430 = vsyncpa [#allocation11], 1 }

</bundles_post_ra>
